<compile_context>
chip_gen: v5e
topology: v5e:2x2
jax: 0.10.0
libtpu: 0.0.40
codegen_flags: <defaults>
</compile_context>

<pallas_src>
import jax
import jax.numpy as jnp
from jax.experimental import pallas as pl
from jax.experimental.pallas import tpu as pltpu


def _transition_kernel(x_ref, w_ref, b_ref, o_ref):
    # x_ref: (Ts, Cin)   pooled-SUM rows (batch * pooled-spatial collapsed), native dtype
    # w_ref: (Cin, Cout) 1x1-conv weight with the 1/4 pool average folded in
    # b_ref: (1, Cout)   conv bias
    # o_ref: (Ts, Cout)
    y = jnp.dot(x_ref[...], w_ref[...], preferred_element_type=jnp.float32)  # MXU, f32 acc
    o_ref[...] = (y + b_ref[...]).astype(o_ref.dtype)


def _round_up(v, m):
    return ((v + m - 1) // m) * m


def _vmem_budgets():
    """Generation-aware (vmem_limit_bytes, per-call block budget).
    v5e/v6e (128 MiB VMEM) -> ~100 MiB limit, ~40 MiB of double-buffered blocks.
    v7x (64 MiB per TC)    -> ~52 MiB limit, ~22 MiB of blocks.
    Conservative (v7x-safe) fallback if the hardware query is unavailable."""
    cap = 64 << 20
    try:
        cap = int(getattr(pltpu.get_tpu_info(), "vmem_capacity_bytes", cap) or cap)
    except Exception:
        pass
    vmem_limit = min(cap - (12 << 20), 100 << 20)            # leave headroom for Mosaic internals
    block_budget = min(max(vmem_limit // 2 - (4 << 20), 8 << 20), 40 << 20)
    return vmem_limit, block_budget


def _choose_row_tile(M, Cin, Cout, itemsize, block_budget):
    """Largest sublane-aligned row tile Ts whose double-buffered blocks fit `block_budget`,
    accounting for lane padding (Cin/Cout rounded to 128) and the f32 accumulator.
    Ts need NOT divide M (ragged last block).  Capped so the grid has >= 2 steps (v7x
    megacore) and at 4096 rows."""
    sublane = max(8, 32 // itemsize)              # f32: 8, bf16: 16, int8/fp8: 32
    if M <= sublane:
        return M                                  # full-dim block (always legal)
    cin_p = _round_up(Cin, 128)
    cout_p = _round_up(Cout, 128)
    fixed = 2 * (cin_p * cout_p * itemsize + cout_p * 4)      # resident weight + bias buffers
    per_row = (cin_p + cout_p) * itemsize + cout_p * 4        # x block + out block + f32 acc
    ts = max(sublane, (block_budget - fixed) // (2 * per_row))  # x2 for double buffering
    ts = min(ts, 4096)                                        # already >> 0.35us/step overhead
    ts = min(ts, _round_up(pl.cdiv(M, 2), sublane))           # guarantee >= 2 grid steps
    ts = max(sublane, (ts // sublane) * sublane)
    return ts


def transition_layer(x_nchw, weight, bias, *, nhwc_out=False):
    """Conv2d(Cin->Cout, kernel 1, stride 1) followed by AvgPool2d(2, 2), matching the
    PyTorch TransitionLayer.  x_nchw: (N, Cin, H, W); weight: (Cout, Cin, 1, 1); bias: (Cout,).
    Returns NCHW (N, Cout, H//2, W//2); pass nhwc_out=True to skip the final relayout and get
    (N, H//2, W//2, Cout) for channels-last consumers."""
    N, Cin, H, W = x_nchw.shape
    Cout = weight.shape[0]
    Hp, Wp = H // 2, W // 2
    M = N * Hp * Wp

    # Pool BEFORE the relayout (pool commutes with the 1x1 conv).  The window-sum fuses with the
    # transpose in XLA, so only a 1/4-sized slab is relayouted.  1/4 is folded into the weight.
    x_even = x_nchw[:, :, :2 * Hp, :2 * Wp]                          # torch AvgPool2d floor trunc
    x_pool = x_even.reshape(N, Cin, Hp, 2, Wp, 2).sum(axis=(3, 5))   # (N, Cin, Hp, Wp) pooled SUM
    x_slab = jnp.transpose(x_pool, (0, 2, 3, 1)).reshape(M, Cin)     # (M, Cin), channels on lanes

    w_mat = weight.reshape(Cout, Cin).T * 0.25                       # (Cin, Cout), exact fold
    b_mat = bias.reshape(1, Cout)

    vmem_limit, block_budget = _vmem_budgets()
    Ts = _choose_row_tile(M, Cin, Cout, jnp.dtype(x_nchw.dtype).itemsize, block_budget)

    out_flat = pl.pallas_call(
        _transition_kernel,
        out_shape=jax.ShapeDtypeStruct((M, Cout), x_nchw.dtype),
        grid_spec=pltpu.PrefetchScalarGridSpec(
            num_scalar_prefetch=0,
            grid=(pl.cdiv(M, Ts),),                                  # Ts need not divide M
            in_specs=[
                pl.BlockSpec((Ts, Cin), lambda m: (m, 0)),           # pooled activations (row tiles)
                pl.BlockSpec((Cin, Cout), lambda m: (0, 0)),         # weight (tiny, resident)
                pl.BlockSpec((1, Cout), lambda m: (0, 0)),           # bias (tiny, resident)
            ],
            out_specs=pl.BlockSpec((Ts, Cout), lambda m: (m, 0)),    # channels on the lane axis
        ),
        compiler_params=pltpu.CompilerParams(
            dimension_semantics=("parallel",),                       # >=2 steps -> v7x megacore
            vmem_limit_bytes=vmem_limit),
    )(x_slab, w_mat, b_mat)

    out_nhwc = out_flat.reshape(N, Hp, Wp, Cout)                     # free reshape
    if nhwc_out:
        return out_nhwc
    return jnp.transpose(out_nhwc, (0, 3, 1, 2))                     # NCHW for PyTorch parity


def _reference(x_nchw, weight, bias):
    """Pure-JAX reference: 1x1 conv + bias, then 2x2 average pool (NCHW)."""
    y = jax.lax.conv_general_dilated(
        x_nchw, weight, window_strides=(1, 1), padding="VALID",
        dimension_numbers=("NCHW", "OIHW", "NCHW"))
    y = y + bias.reshape(1, -1, 1, 1)
    y = jax.lax.reduce_window(
        y, 0.0, jax.lax.add, (1, 1, 2, 2), (1, 1, 2, 2), "VALID") / 4.0
    return y


if __name__ == "__main__":
    # Small shapes consistent with the module: batch=2, in_features=4, out_features=8, spatial=16.
    N, Cin, Cout, H, W = 2, 4, 8, 16, 16

    key = jax.random.PRNGKey(0)
    kx, kw, kb = jax.random.split(key, 3)
    x = jax.random.normal(kx, (N, Cin, H, W), dtype=jnp.float32)
    weight = jax.random.normal(kw, (Cout, Cin, 1, 1), dtype=jnp.float32) * 0.1
    bias = jax.random.normal(kb, (Cout,), dtype=jnp.float32) * 0.1

    out = jax.block_until_ready(transition_layer(x, weight, bias))
    ref = jax.block_until_ready(_reference(x, weight, bias))

    assert out.shape == (N, Cout, H // 2, W // 2), out.shape
    assert jnp.allclose(out, ref, atol=1e-5, rtol=1e-5), "mismatch vs reference"

    print("KERNEL_OK")
</pallas_src>

<mosaic_0001>
module attributes {stable_mosaic.version = 11 : i64} {
  func.func @_transition_kernel(%arg0: i32, %arg1: memref<64x4xf32, #tpu.memory_space<vmem>>, %arg2: memref<4x8xf32, #tpu.memory_space<vmem>>, %arg3: memref<1x8xf32, #tpu.memory_space<vmem>>, %arg4: memref<64x8xf32, #tpu.memory_space<vmem>>) attributes {dimension_semantics = [#tpu.dimension_semantics<parallel>], iteration_bounds = array<i64: 2>, scalar_prefetch = 0 : i64, scratch_operands = 0 : i64, tpu.core_type = #tpu.core_type<tc>, window_params = [{transform_indices = @transform_0, window_bounds = array<i64: 64, 4>}, {pipeline_mode = #tpu.pipeline_mode<synchronous>, transform_indices = @transform_1, window_bounds = array<i64: 4, 8>}, {pipeline_mode = #tpu.pipeline_mode<synchronous>, transform_indices = @transform_2, window_bounds = array<i64: 1, 8>}, {transform_indices = @transform_3, window_bounds = array<i64: 64, 8>}]} {
    %c0 = arith.constant 0 : index
    %c0_0 = arith.constant 0 : index
    %0 = vector.load %arg1[%c0, %c0_0] : memref<64x4xf32, #tpu.memory_space<vmem>>, vector<64x4xf32>
    %c0_1 = arith.constant 0 : index
    %c0_2 = arith.constant 0 : index
    %1 = vector.load %arg2[%c0_1, %c0_2] : memref<4x8xf32, #tpu.memory_space<vmem>>, vector<4x8xf32>
    %cst = arith.constant dense<0.000000e+00> : vector<64x8xf32>
    %2 = tpu.matmul %0, %1, %cst {dimension_numbers = #tpu.dot_dimension_numbers<[1], [0], [0], [1], [0, 0, 1, 1], [], []>} : vector<64x4xf32>, vector<4x8xf32>, vector<64x8xf32> -> vector<64x8xf32>
    %c0_3 = arith.constant 0 : index
    %c0_4 = arith.constant 0 : index
    %3 = vector.load %arg3[%c0_3, %c0_4] : memref<1x8xf32, #tpu.memory_space<vmem>>, vector<1x8xf32>
    %4 = vector.broadcast %3 : vector<1x8xf32> to vector<64x8xf32>
    %5 = arith.addf %2, %4 : vector<64x8xf32>
    %c0_5 = arith.constant 0 : index
    %c0_6 = arith.constant 0 : index
    %6 = vector.load %arg4[%c0_5, %c0_6] : memref<64x8xf32, #tpu.memory_space<vmem>>, vector<64x8xf32>
    tpu.vector_store %arg4[%c0_5, %c0_6], %5 {strides = array<i32>} : memref<64x8xf32, #tpu.memory_space<vmem>>, vector<64x8xf32>,
    return
  }
  func.func @transform_0(%arg0: i32) -> (i32, i32) {
    %c0_i32 = arith.constant 0 : i32
    %c0_i32_0 = arith.constant 0 : i32
    return %arg0, %c0_i32 : i32, i32
  }
  func.func @transform_1(%arg0: i32) -> (i32, i32) {
    %c0_i32 = arith.constant 0 : i32
    %c0_i32_0 = arith.constant 0 : i32
    %c0_i32_1 = arith.constant 0 : i32
    return %c0_i32, %c0_i32_0 : i32, i32
  }
  func.func @transform_2(%arg0: i32) -> (i32, i32) {
    %c0_i32 = arith.constant 0 : i32
    %c0_i32_0 = arith.constant 0 : i32
    %c0_i32_1 = arith.constant 0 : i32
    return %c0_i32, %c0_i32_0 : i32, i32
  }
  func.func @transform_3(%arg0: i32) -> (i32, i32) {
    %c0_i32 = arith.constant 0 : i32
    %c0_i32_0 = arith.constant 0 : i32
    return %arg0, %c0_i32 : i32, i32
  }
}

</mosaic_0001>

<bundles_post_ra>
// kernel: tpu_custom_call.1
= control target key start
LH: loop header
LB: loop body
LE: loop exit
PB: predicated region body
PF: predicated region fallthrough
CT: control target
= control target key end

     0   :  { %s382_s12 = smov 0   ;;  %s421_s0 = inlined_call_operand.vmem [shape: f32[128,4], index: 0, kind: input, shape index: {}]   ;;  %s422_s1 = inlined_call_operand.vmem [shape: f32[4,8], index: 1, kind: input, shape index: {}]   ;;  %s423_s2 = inlined_call_operand.vmem [shape: f32[1,8], index: 2, kind: input, shape index: {}]   ;;  %s424_s3 = inlined_call_operand.vmem [shape: f32[128,8], index: 3, kind: output, shape index: {}]  }
   0x1 LB: > { %s322_s13 = sadd.s32 4294967295, %s360_s12   ;;  %p326_p0 = scmp.ge.s32.totalorder %s360_s12, 1  ;;  %s360_s12 = sphi %s382_s12, %s13_s12  }
   0x2   : > { %p138_p1 = scmp.lt.s32.totalorder %s360_s12, 3 }
   0x4   : > { %p139_p2 = pnand %p326_p0, %p138_p1 }
   0x5   : > { %s327_s16 = sshll.u32 (!%p139_p2), %s322_s13, 3 }
   0x6   : > { %142 = sbr.rel (%p139_p2) target bundleno = 159 (0x9f), region = 32  ;;  %p163_p3 = scmp.lt.s32.totalorder (!%p139_p2), %s327_s16, 15 }
   0xb   : > { %v182_v0 = vld [vmem:[%s422_s1] sm:$0xf]  ;;  %vm212_vm0 = vcmask 1043456   ;;  %s426_s16 = smov (!%p163_p3, %s327_s16), 15  ;;  %vm187_vm1 = vcmask 31744   ;;  %vm257_vm2 = vcmask 64512  }
   0xc   : > { %343 = vmatpush.msk.msra.mxu2 %vm212_vm0, %v182_v0  ;;  %344 = vmatpush.msk.msra.mxu3 %vm212_vm0, %v182_v0  ;;  %s328_s17 = sshll.u32 %s426_s16, 3  ;;  %v353_v9 = vld [vmem:[%s423_s2] ss:$0 sm:$0xff] }
   0xd   : > { %331 = vmatpush.msk.msra.mxu0 %vm212_vm0, %v182_v0  ;;  %342 = vmatpush.msk.msra.mxu1 %vm212_vm0, %v182_v0  ;;  %s166_s20 = scalar_lea.vmem %s421_s0, %s328_s17  ;;  %s172_s25 = scalar_lea.vmem %s424_s3, %s328_s17 }
   0xe   : > { %v178_v1 = vld [vmem:[%s166_s20 + $0x20] sm:$0xff]  ;;  %v180_v2 = vld [vmem:[%s166_s20 + $0x30] sm:$0xff]  ;;  %v179_v5 = vld [vmem:[%s166_s20 + $0x28] sm:$0xff] }
   0xf   : > { %v174_v3 = vld [vmem:[%s166_s20] sm:$0xff]  ;;  %336 = vmatmul.msk.f32.vlgmr.msra.gmra.mxu2 %vm187_vm1, %v178_v1  ;;  %338 = vmatmul.msk.f32.vlgmr.msra.gmra.mxu3 %vm187_vm1, %v180_v2  ;;  %v176_v4 = vld [vmem:[%s166_s20 + $0x10] sm:$0xff]  ;;  %v181_v6 = vld [vmem:[%s166_s20 + $0x38] sm:$0xff] }
  0x10   : > { %332 = vmatmul.msk.f32.vlgmr.msra.gmra.mxu0 %vm187_vm1, %v174_v3  ;;  %334 = vmatmul.msk.f32.vlgmr.msra.gmra.mxu1 %vm187_vm1, %v176_v4  ;;  %v175_v7 = vld [vmem:[%s166_s20 + $0x8] sm:$0xff]  ;;  %v177_v8 = vld [vmem:[%s166_s20 + $0x18] sm:$0xff] }
  0x17   : > { %337 = vmatmul.msk.f32.gmra.mxu2 %vm187_vm1, %v179_v5  ;;  %339 = vmatmul.msk.f32.gmra.mxu3 %vm187_vm1, %v181_v6 }
  0x18   : > { %333 = vmatmul.msk.f32.gmra.mxu0 %vm187_vm1, %v175_v7  ;;  %335 = vmatmul.msk.f32.gmra.mxu1 %vm187_vm1, %v177_v8 }
  0x8d   : > { %v233_v10 = vpop.f32.mrf.mxu0  ;;  %v239_v11 = vpop.f32.mrf.mxu1 }
  0x8e   : > { %v234_v12 = vadd.f32 %v353_v9, %v233_v10  ;;  %v240_v13 = vadd.f32 %v353_v9, %v239_v11 }
  0x90   : > { %258 = vst.msk [vmem:[%s172_s25] sm:$0xff] %vm257_vm2, %v234_v12 }
  0x91   : > { %260 = vst.msk [vmem:[%s172_s25 + $0x10] sm:$0xff] %vm257_vm2, %v240_v13 }
  0x92   : > { %v245_v14 = vpop.f32.mrf.mxu2  ;;  %v251_v15 = vpop.f32.mrf.mxu3 }
  0x93   : > { %v246_v16 = vadd.f32 %v353_v9, %v245_v14  ;;  %v252_v17 = vadd.f32 %v353_v9, %v251_v15 }
  0x95   : > { %262 = vst.msk [vmem:[%s172_s25 + $0x20] sm:$0xff] %vm257_vm2, %v246_v16  ;;  %v236_v18 = vpop.f32.mrf.mxu0  ;;  %v242_v19 = vpop.f32.mrf.mxu1 }
  0x96   : > { %264 = vst.msk [vmem:[%s172_s25 + $0x30] sm:$0xff] %vm257_vm2, %v252_v17  ;;  %v237_v20 = vadd.f32 %v353_v9, %v236_v18  ;;  %v243_v21 = vadd.f32 %v353_v9, %v242_v19 }
  0x98   : > { %259 = vst.msk [vmem:[%s172_s25 + $0x8] sm:$0xff] %vm257_vm2, %v237_v20 }
  0x99   : > { %261 = vst.msk [vmem:[%s172_s25 + $0x18] sm:$0xff] %vm257_vm2, %v243_v21 }
  0x9a   : > { %v248_v22 = vpop.f32.mrf.mxu2  ;;  %v254_v23 = vpop.f32.mrf.mxu3 }
  0x9b   : > { %v249_v24 = vadd.f32 %v353_v9, %v248_v22  ;;  %v255_v25 = vadd.f32 %v353_v9, %v254_v23 }
  0x9d   : > { %263 = vst.msk [vmem:[%s172_s25 + $0x28] sm:$0xff] %vm257_vm2, %v249_v24 }
  0x9e   : > { %265 = vst.msk [vmem:[%s172_s25 + $0x38] sm:$0xff] %vm257_vm2, %v255_v25 }
  0x9f PF: > { %s13_s12 = sadd.s32 1, %s360_s12  }
  0xa0   : > { %p10_p4 = scmp.ge.s32.totalorder %s13_s12, 4  }
  0xa2   :  { %12 = sbr.rel (!%p10_p4) target bundleno = 1 (0x1), region = 62 }

</bundles_post_ra>
